<compile_context>
chip_gen: v7x
topology: tpu7x:2x2x1
jax: 0.10.0
libtpu: 0.0.40
codegen_flags: <defaults>
</compile_context>

<pallas_src>
import jax
import jax.numpy as jnp
from jax.experimental import pallas as pl
from jax.experimental.pallas import tpu as pltpu

# ---------------- synthetic, small configuration ----------------
B = 2              # batch_size
S = 8              # sent_len
WORD_VOCAB = 100
WORD_EMB = 32      # data.word_emb_dim
FEAT_NUM = 2
FEAT_VOCABS = (10, 12)
FEAT_EMBS = (8, 8)
CHAR_VOCAB = 30
CHAR_EMB = 16      # data.char_emb_dim
CHAR_HID = 24      # data.HP_char_hidden_dim (Conv1d out channels)
WORD_LEN = 8       # char word length (L); L * CHAR_EMB = 128 (lane-dense)
N = B * S          # rows on the char path (batch_size * sent_len)

TN_CAP = 512       # row-tile cap (mem-bound: ~85% HBM roofline at 512-row tiles)


def _round_up(x, m):
    return (x + m - 1) // m * m


# ------------- fused kernel: banded CharCNN + max-pool + bias + concat --------
def wordrep_kernel(word_ref, f0_ref, f1_ref, char_ref, wband_ref, b_ref, o_ref):
    tn = word_ref.shape[0]
    L = wband_ref.shape[0]

    # (tn, L*Cin) = (tn, 128) bf16, lane-dense MXU operand.
    x = char_ref[...]

    # Conv1d(kernel=3, padding=1) as L block-banded matmuls, K = L*Cin = 128
    # (MXU-native contraction width); the elementwise running maximum over the
    # L per-position results IS the max-pool over the word length.  Padded char
    # positions participate in the max (conv over zero embeddings), matching
    # NCRF++ CharCNN semantics; char_seq_lengths is intentionally unused.
    mx = jnp.dot(x, wband_ref[0], preferred_element_type=jnp.float32)     # (tn, Cout) f32
    for l in range(1, L):                                                 # static unroll
        mx = jnp.maximum(
            mx, jnp.dot(x, wband_ref[l], preferred_element_type=jnp.float32))
    char_feat = mx + b_ref[...]       # bias after pool (position-independent)

    # Fused concat([word, feat0, feat1, char], -1), zero-padded to a 128-lane
    # slab so the store is a single unmasked lane-dense vst.
    feat = jnp.concatenate(
        [word_ref[...], f0_ref[...], f1_ref[...], char_feat], axis=-1)
    pad = o_ref.shape[-1] - feat.shape[-1]
    if pad:  # static
        feat = jnp.concatenate(
            [feat, jnp.zeros((tn, pad), feat.dtype)], axis=-1)
    # TODO(synk): nn.Dropout training-mode random mask not ported (torch RNG);
    # eval-mode (identity) semantics are used here.
    o_ref[...] = feat


# ---------------- parameter construction (deterministic) ----------------------
def init_params(key):
    ks = jax.random.split(key, 5 + FEAT_NUM)

    def rand_emb(k, vocab, dim):                     # matches WordRep.random_embedding
        scale = jnp.sqrt(3.0 / dim)
        return jax.random.uniform(k, (vocab, dim), jnp.float32, -scale, scale)

    params = {
        "word_emb": rand_emb(ks[0], WORD_VOCAB, WORD_EMB),
        "feat_emb": [rand_emb(ks[1 + i], FEAT_VOCABS[i], FEAT_EMBS[i])
                     for i in range(FEAT_NUM)],
        "char_emb": rand_emb(ks[1 + FEAT_NUM], CHAR_VOCAB, CHAR_EMB),
        # torch Conv1d weight is (Cout, Cin, K); stored here as (K, Cin, Cout).
        "char_cnn_w": 0.1 * jax.random.normal(ks[2 + FEAT_NUM],
                                              (3, CHAR_EMB, CHAR_HID), jnp.float32),
        "char_cnn_b": 0.1 * jax.random.normal(ks[3 + FEAT_NUM],
                                              (CHAR_HID,), jnp.float32),
    }
    return params


# ---------------- WordRep.forward ---------------------------------------------
def wordrep_forward(params, word_inputs, feature_inputs, word_seq_lengths,
                    char_inputs, char_seq_lengths, char_seq_recover):
    del word_seq_lengths, char_seq_lengths  # unused by the CNN char path
    b, s = word_inputs.shape
    rows = b * s
    dw = params["word_emb"].shape[1]
    d_feats = [e.shape[1] for e in params["feat_emb"]]
    cin = params["char_emb"].shape[1]
    cout = params["char_cnn_b"].shape[0]
    d_total = dw + sum(d_feats) + cout
    L = char_inputs.shape[1]

    # Embedding gathers stay in XLA (word/feature tables kept f32 for parity;
    # only the MXU char operand is bf16).
    word_embs = jnp.take(params["word_emb"], word_inputs.reshape(rows), axis=0)
    f0_embs = jnp.take(params["feat_emb"][0], feature_inputs[0].reshape(rows), axis=0)
    f1_embs = jnp.take(params["feat_emb"][1], feature_inputs[1].reshape(rows), axis=0)

    # Apply char_seq_recover to the *indices*: the CNN is per-row, so gathering
    # inputs is equivalent to gathering outputs -> char features land in word
    # order straight out of the kernel.  Cast the table to bf16 BEFORE the
    # gather (halves gather write + kernel read; MXU consumes bf16 either way).
    char_ids = jnp.take(char_inputs, char_seq_recover, axis=0)              # (rows, L)
    char_tbl_bf16 = params["char_emb"].astype(jnp.bfloat16)
    char_embs = jnp.take(char_tbl_bf16, char_ids, axis=0)                   # (rows, L, Cin)
    char_flat = char_embs.reshape(rows, L * cin)                            # (rows, 128) bf16

    # Block-banded conv weight (built once per trace, tiny): wband[l] is the
    # (L*Cin, Cout) matrix producing conv output position l; zero blocks encode
    # the padding=1 boundary.
    w = params["char_cnn_w"].astype(jnp.bfloat16)                           # (3, Cin, Cout)
    zero_blk = jnp.zeros((cin, cout), jnp.bfloat16)
    wband = jnp.stack([
        jnp.concatenate(
            [w[li - lo + 1] if 0 <= li - lo + 1 < 3 else zero_blk
             for li in range(L)], axis=0)                                   # (L*Cin, Cout)
        for lo in range(L)], axis=0)                                        # (L, L*Cin, Cout)
    bias2 = params["char_cnn_b"].reshape(1, cout).astype(jnp.float32)

    # Row tiling: cap 512, and keep >= 2 parallel grid steps whenever rows
    # allow it (v7x has 2 TensorCores; parallel grid axis shards across them).
    tn = min(TN_CAP, max(8, _round_up((rows + 1) // 2, 8)))
    rows_p = _round_up(rows, tn)
    d_pad = _round_up(d_total, 128)

    def pad_rows(x):
        if rows_p == rows:
            return x
        return jnp.pad(x, ((0, rows_p - rows), (0, 0)))

    word_p = pad_rows(word_embs)
    f0_p = pad_rows(f0_embs)
    f1_p = pad_rows(f1_embs)
    char_p = pad_rows(char_flat)

    # Advisory cost estimate so XLA overlaps the surrounding gathers/casts.
    flops = 2 * rows_p * L * (L * cin) * cout
    bytes_accessed = (word_p.size * 4 + f0_p.size * 4 + f1_p.size * 4
                      + char_p.size * 2 + wband.size * 2 + bias2.size * 4
                      + rows_p * d_pad * 4)
    cost = pl.CostEstimate(flops=flops, transcendentals=0,
                           bytes_accessed=bytes_accessed)

    out = pl.pallas_call(
        wordrep_kernel,
        out_shape=jax.ShapeDtypeStruct((rows_p, d_pad), jnp.float32),
        grid=(rows_p // tn,),
        in_specs=[
            pl.BlockSpec((tn, dw), lambda i: (i, 0)),
            pl.BlockSpec((tn, d_feats[0]), lambda i: (i, 0)),
            pl.BlockSpec((tn, d_feats[1]), lambda i: (i, 0)),
            pl.BlockSpec((tn, L * cin), lambda i: (i, 0)),
            pl.BlockSpec((L, L * cin, cout), lambda i: (0, 0, 0)),
            pl.BlockSpec((1, cout), lambda i: (0, 0)),
        ],
        out_specs=pl.BlockSpec((tn, d_pad), lambda i: (i, 0)),
        compiler_params=pltpu.CompilerParams(
            dimension_semantics=("parallel",),
            vmem_limit_bytes=32 * 1024 * 1024),   # documented budget; safe on v5e/v6e/v7x
        cost_estimate=cost,
    )(word_p, f0_p, f1_p, char_p, wband, bias2)

    # TODO(synk): in a fused pipeline the consumer should accept the zero-padded
    # (rows_p, 128) slab directly; the lane crop below costs an extra
    # output-sized copy and exists only for module-parity of the return shape.
    return out[:rows, :d_total].reshape(b, s, d_total)


# ---------------- pure-JAX f32 reference (matches torch forward) --------------
def wordrep_reference(params, word_inputs, feature_inputs, char_inputs,
                      char_seq_recover):
    b, s = word_inputs.shape
    rows = b * s
    word_embs = params["word_emb"][word_inputs.reshape(rows)]
    f0 = params["feat_emb"][0][feature_inputs[0].reshape(rows)]
    f1 = params["feat_emb"][1][feature_inputs[1].reshape(rows)]
    ce = params["char_emb"][char_inputs]                     # (rows, L, Cin) f32
    L = ce.shape[1]
    xp = jnp.pad(ce, ((0, 0), (1, 1), (0, 0)))
    w = params["char_cnn_w"]                                 # (3, Cin, Cout)
    conv = sum(jnp.einsum("rlc,co->rlo", xp[:, k:k + L], w[k]) for k in range(3))
    conv = conv + params["char_cnn_b"]
    char_feat = conv.max(axis=1)                             # (rows, Cout)
    char_feat = char_feat[char_seq_recover]                  # recover word order
    return jnp.concatenate([word_embs, f0, f1, char_feat], -1).reshape(b, s, -1)


if __name__ == "__main__":
    key = jax.random.PRNGKey(0)
    kp, k1, k2, k3, k4, k5 = jax.random.split(key, 6)
    params = init_params(kp)

    word_inputs = jax.random.randint(k1, (B, S), 0, WORD_VOCAB, jnp.int32)
    feature_inputs = [
        jax.random.randint(k2, (B, S), 0, FEAT_VOCABS[0], jnp.int32),
        jax.random.randint(k3, (B, S), 0, FEAT_VOCABS[1], jnp.int32),
    ]
    word_seq_lengths = jnp.full((B, 1), S, jnp.int32)
    char_inputs = jax.random.randint(k4, (N, WORD_LEN), 0, CHAR_VOCAB, jnp.int32)
    char_seq_lengths = jnp.full((N, 1), WORD_LEN, jnp.int32)   # unused by CharCNN path
    char_seq_recover = jax.random.permutation(k5, N).astype(jnp.int32)

    out = wordrep_forward(params, word_inputs, feature_inputs, word_seq_lengths,
                          char_inputs, char_seq_lengths, char_seq_recover)
    out = jax.block_until_ready(out)
    assert out.shape == (B, S, WORD_EMB + sum(FEAT_EMBS) + CHAR_HID)

    # bf16 MXU operands (f32 accumulation) vs f32 torch reference: loose tolerance.
    ref = wordrep_reference(params, word_inputs, feature_inputs, char_inputs,
                            char_seq_recover)
    max_err = float(jnp.max(jnp.abs(out - ref)))
    assert max_err < 5e-2, f"max abs err {max_err}"

    print("KERNEL_OK")
</pallas_src>

<mosaic_0001>
module attributes {stable_mosaic.version = 11 : i64} {
  func.func @wordrep_kernel(%arg0: i32, %arg1: memref<8x32xf32, #tpu.memory_space<vmem>>, %arg2: memref<8x8xf32, #tpu.memory_space<vmem>>, %arg3: memref<8x8xf32, #tpu.memory_space<vmem>>, %arg4: memref<8x128xbf16, #tpu.memory_space<vmem>>, %arg5: memref<8x128x24xbf16, #tpu.memory_space<vmem>>, %arg6: memref<1x24xf32, #tpu.memory_space<vmem>>, %arg7: memref<8x128xf32, #tpu.memory_space<vmem>>) attributes {dimension_semantics = [#tpu.dimension_semantics<parallel>], iteration_bounds = array<i64: 2>, scalar_prefetch = 0 : i64, scratch_operands = 0 : i64, tpu.core_type = #tpu.core_type<tc>, window_params = [{transform_indices = @transform_0, window_bounds = array<i64: 8, 32>}, {transform_indices = @transform_1, window_bounds = array<i64: 8, 8>}, {transform_indices = @transform_2, window_bounds = array<i64: 8, 8>}, {transform_indices = @transform_3, window_bounds = array<i64: 8, 128>}, {pipeline_mode = #tpu.pipeline_mode<synchronous>, transform_indices = @transform_4, window_bounds = array<i64: 8, 128, 24>}, {pipeline_mode = #tpu.pipeline_mode<synchronous>, transform_indices = @transform_5, window_bounds = array<i64: 1, 24>}, {transform_indices = @transform_6, window_bounds = array<i64: 8, 128>}]} {
    %c0 = arith.constant 0 : index
    %c0_0 = arith.constant 0 : index
    %0 = vector.load %arg4[%c0, %c0_0] : memref<8x128xbf16, #tpu.memory_space<vmem>>, vector<8x128xbf16>
    %c0_1 = arith.constant 0 : index
    %c0_2 = arith.constant 0 : index
    %c0_3 = arith.constant 0 : index
    %1 = vector.load %arg5[%c0_1, %c0_2, %c0_3] : memref<8x128x24xbf16, #tpu.memory_space<vmem>>, vector<1x128x24xbf16>
    %2 = vector.shape_cast %1 : vector<1x128x24xbf16> to vector<128x24xbf16>
    %cst = arith.constant dense<0.000000e+00> : vector<8x24xf32>
    %3 = tpu.matmul %0, %2, %cst {dimension_numbers = #tpu.dot_dimension_numbers<[1], [0], [0], [1], [0, 0, 1, 1], [], []>} : vector<8x128xbf16>, vector<128x24xbf16>, vector<8x24xf32> -> vector<8x24xf32>
    %c1 = arith.constant 1 : index
    %c0_4 = arith.constant 0 : index
    %c0_5 = arith.constant 0 : index
    %4 = vector.load %arg5[%c1, %c0_4, %c0_5] : memref<8x128x24xbf16, #tpu.memory_space<vmem>>, vector<1x128x24xbf16>
    %5 = vector.shape_cast %4 : vector<1x128x24xbf16> to vector<128x24xbf16>
    %cst_6 = arith.constant dense<0.000000e+00> : vector<8x24xf32>
    %6 = tpu.matmul %0, %5, %cst_6 {dimension_numbers = #tpu.dot_dimension_numbers<[1], [0], [0], [1], [0, 0, 1, 1], [], []>} : vector<8x128xbf16>, vector<128x24xbf16>, vector<8x24xf32> -> vector<8x24xf32>
    %7 = arith.maximumf %3, %6 : vector<8x24xf32>
    %c2 = arith.constant 2 : index
    %c0_7 = arith.constant 0 : index
    %c0_8 = arith.constant 0 : index
    %8 = vector.load %arg5[%c2, %c0_7, %c0_8] : memref<8x128x24xbf16, #tpu.memory_space<vmem>>, vector<1x128x24xbf16>
    %9 = vector.shape_cast %8 : vector<1x128x24xbf16> to vector<128x24xbf16>
    %cst_9 = arith.constant dense<0.000000e+00> : vector<8x24xf32>
    %10 = tpu.matmul %0, %9, %cst_9 {dimension_numbers = #tpu.dot_dimension_numbers<[1], [0], [0], [1], [0, 0, 1, 1], [], []>} : vector<8x128xbf16>, vector<128x24xbf16>, vector<8x24xf32> -> vector<8x24xf32>
    %11 = arith.maximumf %7, %10 : vector<8x24xf32>
    %c3 = arith.constant 3 : index
    %c0_10 = arith.constant 0 : index
    %c0_11 = arith.constant 0 : index
    %12 = vector.load %arg5[%c3, %c0_10, %c0_11] : memref<8x128x24xbf16, #tpu.memory_space<vmem>>, vector<1x128x24xbf16>
    %13 = vector.shape_cast %12 : vector<1x128x24xbf16> to vector<128x24xbf16>
    %cst_12 = arith.constant dense<0.000000e+00> : vector<8x24xf32>
    %14 = tpu.matmul %0, %13, %cst_12 {dimension_numbers = #tpu.dot_dimension_numbers<[1], [0], [0], [1], [0, 0, 1, 1], [], []>} : vector<8x128xbf16>, vector<128x24xbf16>, vector<8x24xf32> -> vector<8x24xf32>
    %15 = arith.maximumf %11, %14 : vector<8x24xf32>
    %c4 = arith.constant 4 : index
    %c0_13 = arith.constant 0 : index
    %c0_14 = arith.constant 0 : index
    %16 = vector.load %arg5[%c4, %c0_13, %c0_14] : memref<8x128x24xbf16, #tpu.memory_space<vmem>>, vector<1x128x24xbf16>
    %17 = vector.shape_cast %16 : vector<1x128x24xbf16> to vector<128x24xbf16>
    %cst_15 = arith.constant dense<0.000000e+00> : vector<8x24xf32>
    %18 = tpu.matmul %0, %17, %cst_15 {dimension_numbers = #tpu.dot_dimension_numbers<[1], [0], [0], [1], [0, 0, 1, 1], [], []>} : vector<8x128xbf16>, vector<128x24xbf16>, vector<8x24xf32> -> vector<8x24xf32>
    %19 = arith.maximumf %15, %18 : vector<8x24xf32>
    %c5 = arith.constant 5 : index
    %c0_16 = arith.constant 0 : index
    %c0_17 = arith.constant 0 : index
    %20 = vector.load %arg5[%c5, %c0_16, %c0_17] : memref<8x128x24xbf16, #tpu.memory_space<vmem>>, vector<1x128x24xbf16>
    %21 = vector.shape_cast %20 : vector<1x128x24xbf16> to vector<128x24xbf16>
    %cst_18 = arith.constant dense<0.000000e+00> : vector<8x24xf32>
    %22 = tpu.matmul %0, %21, %cst_18 {dimension_numbers = #tpu.dot_dimension_numbers<[1], [0], [0], [1], [0, 0, 1, 1], [], []>} : vector<8x128xbf16>, vector<128x24xbf16>, vector<8x24xf32> -> vector<8x24xf32>
    %23 = arith.maximumf %19, %22 : vector<8x24xf32>
    %c6 = arith.constant 6 : index
    %c0_19 = arith.constant 0 : index
    %c0_20 = arith.constant 0 : index
    %24 = vector.load %arg5[%c6, %c0_19, %c0_20] : memref<8x128x24xbf16, #tpu.memory_space<vmem>>, vector<1x128x24xbf16>
    %25 = vector.shape_cast %24 : vector<1x128x24xbf16> to vector<128x24xbf16>
    %cst_21 = arith.constant dense<0.000000e+00> : vector<8x24xf32>
    %26 = tpu.matmul %0, %25, %cst_21 {dimension_numbers = #tpu.dot_dimension_numbers<[1], [0], [0], [1], [0, 0, 1, 1], [], []>} : vector<8x128xbf16>, vector<128x24xbf16>, vector<8x24xf32> -> vector<8x24xf32>
    %27 = arith.maximumf %23, %26 : vector<8x24xf32>
    %c7 = arith.constant 7 : index
    %c0_22 = arith.constant 0 : index
    %c0_23 = arith.constant 0 : index
    %28 = vector.load %arg5[%c7, %c0_22, %c0_23] : memref<8x128x24xbf16, #tpu.memory_space<vmem>>, vector<1x128x24xbf16>
    %29 = vector.shape_cast %28 : vector<1x128x24xbf16> to vector<128x24xbf16>
    %cst_24 = arith.constant dense<0.000000e+00> : vector<8x24xf32>
    %30 = tpu.matmul %0, %29, %cst_24 {dimension_numbers = #tpu.dot_dimension_numbers<[1], [0], [0], [1], [0, 0, 1, 1], [], []>} : vector<8x128xbf16>, vector<128x24xbf16>, vector<8x24xf32> -> vector<8x24xf32>
    %31 = arith.maximumf %27, %30 : vector<8x24xf32>
    %c0_25 = arith.constant 0 : index
    %c0_26 = arith.constant 0 : index
    %32 = vector.load %arg6[%c0_25, %c0_26] : memref<1x24xf32, #tpu.memory_space<vmem>>, vector<1x24xf32>
    %33 = vector.broadcast %32 : vector<1x24xf32> to vector<8x24xf32>
    %34 = arith.addf %31, %33 : vector<8x24xf32>
    %c0_27 = arith.constant 0 : index
    %c0_28 = arith.constant 0 : index
    %35 = vector.load %arg1[%c0_27, %c0_28] : memref<8x32xf32, #tpu.memory_space<vmem>>, vector<8x32xf32>
    %c0_29 = arith.constant 0 : index
    %c0_30 = arith.constant 0 : index
    %36 = vector.load %arg2[%c0_29, %c0_30] : memref<8x8xf32, #tpu.memory_space<vmem>>, vector<8x8xf32>
    %c0_31 = arith.constant 0 : index
    %c0_32 = arith.constant 0 : index
    %37 = vector.load %arg3[%c0_31, %c0_32] : memref<8x8xf32, #tpu.memory_space<vmem>>, vector<8x8xf32>
    %38 = tpu.concatenate %35, %36, %37, %34 in 1 : vector<8x32xf32>, vector<8x8xf32>, vector<8x8xf32>, vector<8x24xf32> -> vector<8x72xf32>
    %cst_33 = arith.constant 0.000000e+00 : f32
    %39 = vector.broadcast %cst_33 : f32 to vector<8x56xf32>
    %40 = tpu.concatenate %38, %39 in 1 : vector<8x72xf32>, vector<8x56xf32> -> vector<8x128xf32>
    %c0_34 = arith.constant 0 : index
    %c0_35 = arith.constant 0 : index
    %41 = vector.load %arg7[%c0_34, %c0_35] : memref<8x128xf32, #tpu.memory_space<vmem>>, vector<8x128xf32>
    tpu.vector_store %arg7[%c0_34, %c0_35], %40 {strides = array<i32>} : memref<8x128xf32, #tpu.memory_space<vmem>>, vector<8x128xf32>,
    return
  }
  func.func @transform_0(%arg0: i32) -> (i32, i32) {
    %c0_i32 = arith.constant 0 : i32
    %c0_i32_0 = arith.constant 0 : i32
    return %arg0, %c0_i32 : i32, i32
  }
  func.func @transform_1(%arg0: i32) -> (i32, i32) {
    %c0_i32 = arith.constant 0 : i32
    %c0_i32_0 = arith.constant 0 : i32
    return %arg0, %c0_i32 : i32, i32
  }
  func.func @transform_2(%arg0: i32) -> (i32, i32) {
    %c0_i32 = arith.constant 0 : i32
    %c0_i32_0 = arith.constant 0 : i32
    return %arg0, %c0_i32 : i32, i32
  }
  func.func @transform_3(%arg0: i32) -> (i32, i32) {
    %c0_i32 = arith.constant 0 : i32
    %c0_i32_0 = arith.constant 0 : i32
    return %arg0, %c0_i32 : i32, i32
  }
  func.func @transform_4(%arg0: i32) -> (i32, i32, i32) {
    %c0_i32 = arith.constant 0 : i32
    %c0_i32_0 = arith.constant 0 : i32
    %c0_i32_1 = arith.constant 0 : i32
    %c0_i32_2 = arith.constant 0 : i32
    return %c0_i32, %c0_i32_0, %c0_i32_1 : i32, i32, i32
  }
  func.func @transform_5(%arg0: i32) -> (i32, i32) {
    %c0_i32 = arith.constant 0 : i32
    %c0_i32_0 = arith.constant 0 : i32
    %c0_i32_1 = arith.constant 0 : i32
    return %c0_i32, %c0_i32_0 : i32, i32
  }
  func.func @transform_6(%arg0: i32) -> (i32, i32) {
    %c0_i32 = arith.constant 0 : i32
    %c0_i32_0 = arith.constant 0 : i32
    return %arg0, %c0_i32 : i32, i32
  }
}

</mosaic_0001>

<bundles_post_ra>
// kernel: tpu_custom_call.1
= control target key start
LH: loop header
LB: loop body
LE: loop exit
PB: predicated region body
PF: predicated region fallthrough
CT: control target
= control target key end

     0   :  { %11 = vsyncpa [#allocation3], 0  ;;  %s2325_s0 = inlined_call_operand.vmem [shape: f32[16,32], index: 0, kind: input, shape index: {}]   ;;  %s2326_s1 = inlined_call_operand.vmem [shape: f32[16,8], index: 1, kind: input, shape index: {}]   ;;  %s2327_s2 = inlined_call_operand.vmem [shape: f32[16,8], index: 2, kind: input, shape index: {}]   ;;  %s2328_s3 = inlined_call_operand.vmem [shape: bf16[16,128], index: 3, kind: input, shape index: {}]   ;;  %s2329_s4 = inlined_call_operand.vmem [shape: bf16[8,128,24], index: 4, kind: input, shape index: {}]   ;;  %s2330_s5 = inlined_call_operand.vmem [shape: f32[1,24], index: 5, kind: input, shape index: {}]   ;;  %s2331_s6 = inlined_call_operand.hbm [shape: f32[16,128], index: 6, kind: output, shape index: {}]  }
   0x1   :  { %13 = vsyncpa [#allocation3 + $0x1], 0  ;;  %s1922_s21 = smov 0   ;;  %s1924_s22 = smov 0  }
   0x2   :  { %s1926_s23 = smov 0   ;;  %s1928_s24 = smov 0  }
   0x3 LB: > { %s1943_s25 = sadd.s32 4294967295, %s1879_s24   ;;  %s1287_s26 = sadd.s32 4294967294, %s1879_s24   ;;  %s1879_s24 = sphi %s1928_s24, %s2337_s24   ;;  %s1875_s23 = sphi %s1926_s23, %s2336_s23   ;;  %s1871_s22 = sphi %s1924_s22, %s2335_s22   ;;  %s1867_s21 = sphi %s1922_s21, %s2334_s21  }
   0x4   : > { %s1947_s27 = sadd.s32 1, %s1879_s24   ;;  %s172_s28 = sadd.s32 1, %s1875_s23 }
   0x5   : > { %s169_s29 = ssub.s32 %s1879_s24, %s1947_s27  ;;  %p182_p0 = scmp.ne.s32.totalorder %s1875_s23, %s1871_s22 }
   0x6   : > { %p170_p1 = scmp.eq.s32.totalorder %s169_s29, 0  ;;  %p183_p2 = scmp.eq.s32.totalorder %s1943_s25, 1 }
   0x7   : > { %p188_p3 = scmp.ne.s32.totalorder %s1871_s22, %s1867_s21  ;;  %p189_p4 = scmp.eq.s32.totalorder %s1287_s26, 1 }
   0x8   : > { %s1958_s30 = scalar_select %p170_p1, %s1875_s23, %s172_s28  }
   0x9   : > { %p1960_p5 = por %p183_p2, %p182_p0  ;;  %p1964_p6 = por %p189_p4, %p188_p3 }
   0xa   : > { %p1290_p7 = scmp.ge.s32.totalorder %s1879_s24, 1  ;;  %p241_p8 = scmp.lt.s32.totalorder %s1879_s24, 3 }
   0xc   : > { %p242_p9 = pnand %p1290_p7, %p241_p8 }
   0xd   : > { %v1753_v0 = vld [vmem:[%s2329_s4] sm:$0xff] (!%p242_p9)   ;;  %v1881_v1 = vmov (!%p242_p9), 0.0   ;;  %v1755_v3 = vld [vmem:[%s2329_s4 + $0x8] sm:$0xff] (!%p242_p9)   ;;  %vm1882_vm0 = vmmov (!%p242_p9), 0   ;;  %v1757_v5 = vld [vmem:[%s2329_s4 + $0x10] sm:$0xff] (!%p242_p9)   ;;  %p282_p10 = scmp.lt.s32.totalorder (!%p242_p9), %s1943_s25, 1 }
   0xe   : > { %245 = sbr.rel (%p242_p9) target bundleno = 491 (0x1eb), region = 44  ;;  %1549 = vmatprep.subr.bf16.mxu0 (!%p242_p9), %v1881_v1  ;;  %1569 = vmatprep.subr.bf16.mxu1 (!%p242_p9), %v1881_v1  ;;  %v1754_v2 = vld [vmem:[%s2329_s4 + $0x40] sm:$0xff] (!%p242_p9)   ;;  %v1756_v4 = vld [vmem:[%s2329_s4 + $0x48] sm:$0xff] (!%p242_p9)   ;;  %v1758_v6 = vld [vmem:[%s2329_s4 + $0x50] sm:$0xff] (!%p242_p9)   ;;  %s1883_s19 = smov (!%p242_p9), 32   ;;  %vm1169_vm1 = vcmask (!%p242_p9), 261120  }
   0xf   : > { %1550 = vmatpush3.bf16.msra.mxu0 (!%p242_p9), %v1753_v0  ;;  %1565 = vmatprep.mubr.msk.bf16.mxu0 (!%p242_p9), %vm1882_vm0, %v1881_v1  ;;  %v1759_v7 = vld [vmem:[%s2329_s4 + $0x18] sm:$0xff] (!%p242_p9)   ;;  %v1761_v9 = vld [vmem:[%s2329_s4 + $0x20] sm:$0xff] (!%p242_p9)   ;;  %v1763_v11 = vld [vmem:[%s2329_s4 + $0x28] sm:$0xff] (!%p242_p9)   ;;  %s1885_s10 = smov (!%p242_p9), 48   ;;  %s279_s11 = sand.u32 (!%p242_p9), 1, %s1871_s22   ;;  %vm1171_vm2 = vcmask (!%p242_p9), 326656  }
  0x10   : > { %1570 = vmatpush3.bf16.msra.mxu1 (!%p242_p9), %v1754_v2  ;;  %1551 = vmatprep.subr.bf16.mxu0 (!%p242_p9), %v1881_v1  ;;  %v1760_v8 = vld [vmem:[%s2329_s4 + $0x58] sm:$0xff] (!%p242_p9)   ;;  %v1762_v10 = vld [vmem:[%s2329_s4 + $0x60] sm:$0xff] (!%p242_p9)   ;;  %v1764_v12 = vld [vmem:[%s2329_s4 + $0x68] sm:$0xff] (!%p242_p9)   ;;  %s1291_s16 = sshll.u32 (!%p242_p9), %s279_s11, 3  ;;  %vm1173_vm3 = vcmask (!%p242_p9), 392192   ;;  %vm1175_vm4 = vcmask (!%p242_p9), 588800  }
  0x11   : > { %1571 = vmatprep.subr.bf16.mxu1 (!%p242_p9), %v1881_v1  ;;  %1585 = vmatprep.mubr.msk.bf16.mxu1 (!%p242_p9), %vm1882_vm0, %v1881_v1  ;;  %v1765_v13 = vld [vmem:[%s2329_s4 + $0x30] sm:$0xff] (!%p242_p9)   ;;  %v1767_v15 = vld [vmem:[%s2329_s4 + $0x38] sm:$0xff] (!%p242_p9)   ;;  %v1769_v18 = vld [vmem:[%s2329_s4 + $0x80] sm:$0xff] (!%p242_p9)  }
  0x12   : > { %v1766_v14 = vld [vmem:[%s2329_s4 + $0x70] sm:$0xff] (!%p242_p9)   ;;  %v1768_v16 = vld [vmem:[%s2329_s4 + $0x78] sm:$0xff] (!%p242_p9)   ;;  %v1770_v19 = vld [vmem:[%s2329_s4 + $0xc0] sm:$0xff] (!%p242_p9)  }
  0x13   : > { %1552 = vmatpush3.bf16.msra.mxu0 (!%p242_p9), %v1755_v3  ;;  %v1771_v20 = vld [vmem:[%s2329_s4 + $0x88] sm:$0xff] (!%p242_p9)   ;;  %v1773_v22 = vld [vmem:[%s2329_s4 + $0x90] sm:$0xff] (!%p242_p9)   ;;  %v1775_v24 = vld [vmem:[%s2329_s4 + $0x98] sm:$0xff] (!%p242_p9)  }
  0x14   : > { %1572 = vmatpush3.bf16.msra.mxu1 (!%p242_p9), %v1756_v4  ;;  %1553 = vmatprep.subr.bf16.mxu0 (!%p242_p9), %v1881_v1  ;;  %v1772_v21 = vld [vmem:[%s2329_s4 + $0xc8] sm:$0xff] (!%p242_p9)   ;;  %v1774_v23 = vld [vmem:[%s2329_s4 + $0xd0] sm:$0xff] (!%p242_p9)   ;;  %v1776_v25 = vld [vmem:[%s2329_s4 + $0xd8] sm:$0xff] (!%p242_p9)  }
  0x15   : > { %1573 = vmatprep.subr.bf16.mxu1 %v1881_v1  ;;  %s2023_s18 = scalar_select %p282_p10, %s1943_s25, 1  ;;  %v1777_v26 = vld [vmem:[%s2329_s4 + $0xa0] sm:$0xff]   ;;  %v1779_v28 = vld [vmem:[%s2329_s4 + $0xa8] sm:$0xff]   ;;  %v1781_v30 = vld [vmem:[%s2329_s4 + $0xb0] sm:$0xff]  }
  0x16   : > { %v1778_v27 = vld [vmem:[%s2329_s4 + $0xe0] sm:$0xff]   ;;  %v1780_v29 = vld [vmem:[%s2329_s4 + $0xe8] sm:$0xff]   ;;  %v1782_v31 = vld [vmem:[%s2329_s4 + $0xf0] sm:$0xff]  }
  0x17   : > { %1554 = vmatpush3.bf16.msra.mxu0 %v1757_v5  ;;  %s1295_s29 = sshll.u32 %s2023_s18, 2  ;;  %v1783_v32 = vld [vmem:[%s2329_s4 + $0xb8] sm:$0xff]   ;;  %v1785_v34 = vld [vmem:[%s2329_s4 + $0x100] sm:$0xff]   ;;  %v1787_v36 = vld [vmem:[%s2329_s4 + $0x108] sm:$0xff]   ;;  %s2261_s14 = sshll.u32 %s2023_s18, 3 }
  0x18   : > { %1574 = vmatpush3.bf16.msra.mxu1 %v1758_v6  ;;  %1555 = vmatprep.subr.bf16.mxu0 %v1881_v1  ;;  %s297_s13 = scalar_lea.vmem %s2328_s3, %s1295_s29  ;;  %v1784_v33 = vld [vmem:[%s2329_s4 + $0xf8] sm:$0xff]   ;;  %v1786_v35 = vld [vmem:[%s2329_s4 + $0x140] sm:$0xff]   ;;  %v1788_v37 = vld [vmem:[%s2329_s4 + $0x148] sm:$0xff]   ;;  %s289_s17 = scalar_lea.vmem %s2326_s1, %s2261_s14 }
  0x19   : > { %1575 = vmatprep.subr.bf16.mxu1 %v1881_v1  ;;  %v2046_v17 = vld [vmem:[%s297_s13] sm:$0xf]  ;;  %v1789_v38 = vld [vmem:[%s2329_s4 + $0x110] sm:$0xff]   ;;  %v1791_v40 = vld [vmem:[%s2329_s4 + $0x118] sm:$0xff]   ;;  %s293_s28 = scalar_lea.vmem %s2327_s2, %s2261_s14  ;;  %s1884_s29 = smov 40  }
  0x1a   : > { %v1790_v39 = vld [vmem:[%s2329_s4 + $0x150] sm:$0xff]   ;;  %v1792_v41 = vld [vmem:[%s2329_s4 + $0x158] sm:$0xff]   ;;  %v1793_v42 = vld [vmem:[%s2329_s4 + $0x120] sm:$0xff]   ;;  %s285_s15 = scalar_lea.vmem %s2325_s0, %s2261_s14  ;;  %s1179_s14 = scalar_lea.sflag [#allocation3], %s279_s11 }
  0x1b   : > { %1556 = vmatpush3.bf16.msra.mxu0 %v1759_v7  ;;  %v1794_v43 = vld [vmem:[%s2329_s4 + $0x160] sm:$0xff]   ;;  %v1795_v44 = vld [vmem:[%s2329_s4 + $0x128] sm:$0xff]   ;;  %v1797_v46 = vld [vmem:[%s2329_s4 + $0x130] sm:$0xff]   ;;  %s1886_s18 = smov [#allocation2]  }
  0x1c   : > { %1576 = vmatpush3.bf16.msra.mxu1 %v1760_v8  ;;  %1557 = vmatprep.subr.bf16.mxu0 %v1881_v1  ;;  %v1796_v45 = vld [vmem:[%s2329_s4 + $0x168] sm:$0xff]   ;;  %v1798_v47 = vld [vmem:[%s2329_s4 + $0x170] sm:$0xff]   ;;  %v1799_v48 = vld [vmem:[%s2329_s4 + $0x138] sm:$0xff]   ;;  %s1821_s9 = sshll.u32 %s1886_s18, 4  ;;  %s1822_s9 = int_to_ptr.vmem [resolvable:$false] %s1821_s9 }
  0x1d   : > { %1577 = vmatprep.subr.bf16.mxu1 %v1881_v1  ;;  %v1800_v49 = vld [vmem:[%s2329_s4 + $0x178] sm:$0xff]   ;;  %v1801_v50 = vld [vmem:[%s2329_s4 + $0x180] sm:$0xff]   ;;  %v1803_v52 = vld [vmem:[%s2329_s4 + $0x188] sm:$0xff]  }
  0x1e   : > { %v1802_v51 = vld [vmem:[%s2329_s4 + $0x1c0] sm:$0xff]   ;;  %v1804_v53 = vld [vmem:[%s2329_s4 + $0x1c8] sm:$0xff]   ;;  %v1805_v54 = vld [vmem:[%s2329_s4 + $0x190] sm:$0xff]  }
  0x1f   : > { %1558 = vmatpush3.bf16.msra.mxu0 %v1761_v9  ;;  %v1806_v55 = vld [vmem:[%s2329_s4 + $0x1d0] sm:$0xff]   ;;  %v1807_v56 = vld [vmem:[%s2329_s4 + $0x198] sm:$0xff]   ;;  %v1809_v58 = vld [vmem:[%s2329_s4 + $0x1a0] sm:$0xff]  }
  0x20   : > { %1578 = vmatpush3.bf16.msra.mxu1 %v1762_v10  ;;  %1559 = vmatprep.subr.bf16.mxu0 %v1881_v1  ;;  %v1808_v57 = vld [vmem:[%s2329_s4 + $0x1d8] sm:$0xff]   ;;  %v1810_v59 = vld [vmem:[%s2329_s4 + $0x1e0] sm:$0xff]   ;;  %v1811_v60 = vld [vmem:[%s2329_s4 + $0x1a8] sm:$0xff]  }
  0x21   : > { %1579 = vmatprep.subr.bf16.mxu1 %v1881_v1  ;;  %v1812_v61 = vld [vmem:[%s2329_s4 + $0x1e8] sm:$0xff]   ;;  %v1813_v62 = vld [vmem:[%s2329_s4 + $0x1b0] sm:$0xff]   ;;  %v1815_v0 = vld [vmem:[%s2329_s4 + $0x1b8] sm:$0xff]  }
  0x22   : > { %v1814_v63 = vld [vmem:[%s2329_s4 + $0x1f0] sm:$0xff]   ;;  %v1816_v2 = vld [vmem:[%s2329_s4 + $0x1f8] sm:$0xff]   ;;  %v1155_v3 = vld [vmem:[%s289_s17] sm:$0xff]  ;;  %s1474_s17 = sshll.u32 %s1943_s25, 7 }
  0x23   : > { %1560 = vmatpush3.bf16.msra.mxu0 %v1763_v11  ;;  %1158 = vrot.lane.b32.xlu0 %v1155_v3, %s1883_s19  ;;  %s281_s19 = scalar_lea.vmem [#allocation2], %s1291_s16 }
  0x24   : > { %1580 = vmatpush3.bf16.msra.mxu1 %v1764_v12  ;;  %1561 = vmatprep.subr.bf16.mxu0 %v1881_v1  ;;  %s1192_s20 = sshll.u32 %s281_s19, 4  ;;  %s2285_s20 = int_to_ptr.vmem [resolvable:$true] %s1192_s20 }
  0x25   : > { %1581 = vmatprep.subr.bf16.mxu1 %v1881_v1  ;;  %s1817_s25 = scalar_lea.vmem %s2285_s20, 128  ;;  %p1824_p0 = scmp.lt.s32.totalorder %s2285_s20, %s1822_s9 }
  0x26   : > { %p1818_p11 = scmp.ne.s32.totalorder %s2285_s20, %s1817_s25 }
  0x27   : > { %1562 = vmatpush3.bf16.msra.mxu0 %v1765_v13 }
  0x28   : > { %1582 = vmatpush3.bf16.msra.mxu1 %v1766_v14  ;;  %1563 = vmatprep.subr.bf16.mxu0 %v1881_v1  ;;  %p1819_p12 = pnand %p1818_p11, %p1960_p5 }
  0x29   : > { %1583 = vmatprep.subr.bf16.mxu1 %v1881_v1 }
  0x2a   : > { %p1820_p13 = pneg %p1819_p12 }
  0x2b   : > { %1564 = vmatpush3.bf16.msra.mxu0 %v1767_v15 }
  0x2c   : > { %1584 = vmatpush3.bf16.msra.mxu1 %v1768_v16  ;;  %1589 = vmatprep.subr.bf16.mxu0 %v1881_v1 }
  0x2d   : > { %1609 = vmatprep.subr.bf16.mxu1 %v1881_v1 }
  0x2e   : > { %1566 = vmatmul.mubr.bf16.vlgmr.msra.gmra.mrb[0].mxu0 %v2046_v17 }
  0x2f   : > { %1586 = vmatmul.mubr.bf16.vlgmr.msra.gmra.mrb[0].mxu1 %v2046_v17  ;;  %1590 = vmatpush3.bf16.msra.mxu0 %v1769_v18 }
  0x30   : > { %1610 = vmatpush3.bf16.msra.mxu1 %v1770_v19  ;;  %1591 = vmatprep.subr.bf16.mxu0 %v1881_v1 }
  0x31   : > { %1611 = vmatprep.subr.bf16.mxu1 %v1881_v1  ;;  %1605 = vmatprep.mubr.msk.bf16.mxu0 %vm1882_vm0, %v1881_v1 }
  0x32   : > { %1625 = vmatprep.mubr.msk.bf16.mxu1 %vm1882_vm0, %v1881_v1 }
  0x33   : > { %1592 = vmatpush3.bf16.msra.mxu0 %v1771_v20 }
  0x34   : > { %1612 = vmatpush3.bf16.msra.mxu1 %v1772_v21  ;;  %1593 = vmatprep.subr.bf16.mxu0 %v1881_v1 }
  0x35   : > { %1613 = vmatprep.subr.bf16.mxu1 %v1881_v1 }
  0x37   : > { %1594 = vmatpush3.bf16.msra.mxu0 %v1773_v22 }
  0x38   : > { %1614 = vmatpush3.bf16.msra.mxu1 %v1774_v23  ;;  %1595 = vmatprep.subr.bf16.mxu0 %v1881_v1 }
  0x39   : > { %1615 = vmatprep.subr.bf16.mxu1 %v1881_v1 }
  0x3b   : > { %1596 = vmatpush3.bf16.msra.mxu0 %v1775_v24 }
  0x3c   : > { %1616 = vmatpush3.bf16.msra.mxu1 %v1776_v25  ;;  %1597 = vmatprep.subr.bf16.mxu0 %v1881_v1 }
  0x3d   : > { %1617 = vmatprep.subr.bf16.mxu1 %v1881_v1 }
  0x3f   : > { %1598 = vmatpush3.bf16.msra.mxu0 %v1777_v26 }
  0x40   : > { %1618 = vmatpush3.bf16.msra.mxu1 %v1778_v27  ;;  %1599 = vmatprep.subr.bf16.mxu0 %v1881_v1 }
  0x41   : > { %1619 = vmatprep.subr.bf16.mxu1 %v1881_v1 }
  0x43   : > { %1600 = vmatpush3.bf16.msra.mxu0 %v1779_v28 }
  0x44   : > { %1620 = vmatpush3.bf16.msra.mxu1 %v1780_v29  ;;  %1601 = vmatprep.subr.bf16.mxu0 %v1881_v1 }
  0x45   : > { %1621 = vmatprep.subr.bf16.mxu1 %v1881_v1 }
  0x47   : > { %1602 = vmatpush3.bf16.msra.mxu0 %v1781_v30 }
  0x48   : > { %1622 = vmatpush3.bf16.msra.mxu1 %v1782_v31  ;;  %1603 = vmatprep.subr.bf16.mxu0 %v1881_v1 }
  0x49   : > { %1623 = vmatprep.subr.bf16.mxu1 %v1881_v1 }
  0x4b   : > { %1604 = vmatpush3.bf16.msra.mxu0 %v1783_v32 }
  0x4c   : > { %1624 = vmatpush3.bf16.msra.mxu1 %v1784_v33  ;;  %1629 = vmatprep.subr.bf16.mxu0 %v1881_v1 }
  0x4d   : > { %1649 = vmatprep.subr.bf16.mxu1 %v1881_v1 }
  0x4e   : > { %1606 = vmatmul.mubr.bf16.vlgmr.msra.gmra.mrb[4].mxu0 %v2046_v17 }
  0x4f   : > { %1626 = vmatmul.mubr.bf16.vlgmr.msra.gmra.mrb[4].mxu1 %v2046_v17  ;;  %1630 = vmatpush3.bf16.msra.mxu0 %v1785_v34 }
  0x50   : > { %1650 = vmatpush3.bf16.msra.mxu1 %v1786_v35  ;;  %1631 = vmatprep.subr.bf16.mxu0 %v1881_v1 }
  0x51   : > { %1651 = vmatprep.subr.bf16.mxu1 %v1881_v1  ;;  %1645 = vmatprep.mubr.msk.bf16.mxu0 %vm1882_vm0, %v1881_v1 }
  0x52   : > { %1665 = vmatprep.mubr.msk.bf16.mxu1 %vm1882_vm0, %v1881_v1 }
  0x53   : > { %1632 = vmatpush3.bf16.msra.mxu0 %v1787_v36 }
  0x54   : > { %1652 = vmatpush3.bf16.msra.mxu1 %v1788_v37  ;;  %1633 = vmatprep.subr.bf16.mxu0 %v1881_v1 }
  0x55   : > { %1653 = vmatprep.subr.bf16.mxu1 %v1881_v1 }
  0x57   : > { %1634 = vmatpush3.bf16.msra.mxu0 %v1789_v38 }
  0x58   : > { %1654 = vmatpush3.bf16.msra.mxu1 %v1790_v39  ;;  %1635 = vmatprep.subr.bf16.mxu0 %v1881_v1  ;;  %v1472_v39 = vld [vmem:[%s2330_s5] ss:$0 sm:$0xff] }
  0x59   : > { %1655 = vmatprep.subr.bf16.mxu1 %v1881_v1 }
  0x5b   : > { %1636 = vmatpush3.bf16.msra.mxu0 %v1791_v40 }
  0x5c   : > { %1656 = vmatpush3.bf16.msra.mxu1 %v1792_v41  ;;  %1637 = vmatprep.subr.bf16.mxu0 %v1881_v1 }
  0x5d   : > { %1657 = vmatprep.subr.bf16.mxu1 %v1881_v1 }
  0x5f   : > { %1638 = vmatpush3.bf16.msra.mxu0 %v1793_v42 }
  0x60   : > { %1658 = vmatpush3.bf16.msra.mxu1 %v1794_v43  ;;  %1639 = vmatprep.subr.bf16.mxu0 %v1881_v1 }
  0x61   : > { %1659 = vmatprep.subr.bf16.mxu1 %v1881_v1 }
  0x63   : > { %1640 = vmatpush3.bf16.msra.mxu0 %v1795_v44 }
  0x64   : > { %1660 = vmatpush3.bf16.msra.mxu1 %v1796_v45  ;;  %1641 = vmatprep.subr.bf16.mxu0 %v1881_v1 }
  0x65   : > { %1661 = vmatprep.subr.bf16.mxu1 %v1881_v1 }
  0x67   : > { %1642 = vmatpush3.bf16.msra.mxu0 %v1797_v46  ;;  %v1154_v46 = vld [vmem:[%s285_s15] sm:$0xff] }
  0x68   : > { %1662 = vmatpush3.bf16.msra.mxu1 %v1798_v47  ;;  %1643 = vmatprep.subr.bf16.mxu0 %v1881_v1 }
  0x69   : > { %1663 = vmatprep.subr.bf16.mxu1 %v1881_v1 }
  0x6b   : > { %1644 = vmatpush3.bf16.msra.mxu0 %v1799_v48 }
  0x6c   : > { %1664 = vmatpush3.bf16.msra.mxu1 %v1800_v49  ;;  %1669 = vmatprep.subr.bf16.mxu0 %v1881_v1 }
  0x6d   : > { %1689 = vmatprep.subr.bf16.mxu1 %v1881_v1 }
  0x6e   : > { %1646 = vmatmul.mubr.bf16.vlgmr.msra.gmra.mrb[8].mxu0 %v2046_v17 }
  0x6f   : > { %1666 = vmatmul.mubr.bf16.vlgmr.msra.gmra.mrb[8].mxu1 %v2046_v17  ;;  %1670 = vmatpush3.bf16.msra.mxu0 %v1801_v50 }
  0x70   : > { %1690 = vmatpush3.bf16.msra.mxu1 %v1802_v51  ;;  %1671 = vmatprep.subr.bf16.mxu0 %v1881_v1 }
  0x71   : > { %1691 = vmatprep.subr.bf16.mxu1 %v1881_v1  ;;  %1685 = vmatprep.mubr.msk.bf16.mxu0 %vm1882_vm0, %v1881_v1 }
  0x72   : > { %1705 = vmatprep.mubr.msk.bf16.mxu1 %vm1882_vm0, %v1881_v1 }
  0x73   : > { %1672 = vmatpush3.bf16.msra.mxu0 %v1803_v52 }
  0x74   : > { %1692 = vmatpush3.bf16.msra.mxu1 %v1804_v53  ;;  %1673 = vmatprep.subr.bf16.mxu0 %v1881_v1 }
  0x75   : > { %1693 = vmatprep.subr.bf16.mxu1 %v1881_v1 }
  0x77   : > { %1674 = vmatpush3.bf16.msra.mxu0 %v1805_v54 }
  0x78   : > { %1694 = vmatpush3.bf16.msra.mxu1 %v1806_v55  ;;  %1675 = vmatprep.subr.bf16.mxu0 %v1881_v1 }
  0x79   : > { %1695 = vmatprep.subr.bf16.mxu1 %v1881_v1 }
  0x7b   : > { %1676 = vmatpush3.bf16.msra.mxu0 %v1807_v56 }
  0x7c   : > { %1696 = vmatpush3.bf16.msra.mxu1 %v1808_v57  ;;  %1677 = vmatprep.subr.bf16.mxu0 %v1881_v1 }
  0x7d   : > { %1697 = vmatprep.subr.bf16.mxu1 %v1881_v1 }
  0x7f   : > { %1678 = vmatpush3.bf16.msra.mxu0 %v1809_v58 }
  0x80   : > { %1698 = vmatpush3.bf16.msra.mxu1 %v1810_v59  ;;  %1679 = vmatprep.subr.bf16.mxu0 %v1881_v1 }
  0x81   : > { %1699 = vmatprep.subr.bf16.mxu1 %v1881_v1 }
  0x83   : > { %1680 = vmatpush3.bf16.msra.mxu0 %v1811_v60 }
  0x84   : > { %1700 = vmatpush3.bf16.msra.mxu1 %v1812_v61  ;;  %1681 = vmatprep.subr.bf16.mxu0 %v1881_v1 }
  0x85   : > { %1701 = vmatprep.subr.bf16.mxu1 %v1881_v1 }
  0x87   : > { %1682 = vmatpush3.bf16.msra.mxu0 %v1813_v62 }
  0x88   : > { %1702 = vmatpush3.bf16.msra.mxu1 %v1814_v63  ;;  %1683 = vmatprep.subr.bf16.mxu0 %v1881_v1 }
  0x89   : > { %1703 = vmatprep.subr.bf16.mxu1 %v1881_v1  ;;  %v1156_v1 = vld [vmem:[%s293_s28] sm:$0xff] }
  0x8a   : > { %1162 = vrot.lane.b32.xlu0 %v1156_v1, %s1884_s29  ;;  %s2283_s29 = scalar_lea.hbm %s2331_s6, %s1474_s17 }
  0x8b   : > { %1684 = vmatpush3.bf16.msra.mxu0 %v1815_v0 }
  0x8c   : > { %1704 = vmatpush3.bf16.msra.mxu1 %v1816_v2 }
  0x8e   : > { %1686 = vmatmul.mubr.bf16.vlgmr.msra.gmra.mrb[12].mxu0 %v2046_v17 }
  0x8f   : > { %1706 = vmatmul.mubr.bf16.vlgmr.msra.gmra.mrb[12].mxu1 %v2046_v17 }
  0x95   : > { %v1159_v45 = vpop.permute.xlu0 %1158 }
  0x96   : > { %v1170_v47 = vsel %vm1169_vm1, %v1154_v46, %v1159_v45 }
  0xfc   : > { %v1163_v48 = vpop.permute.xlu0 %1162 }
  0xfd   : > { %v1172_v49 = vsel %vm1171_vm2, %v1170_v47, %v1163_v48 }
 0x101   : > { %v398_v4 = vpop.f32.mrb[0].mxu0 }
 0x102   : > { %v503_v5 = vpop.f32.mrb[0].mxu1  ;;  %v1567_v6 = vpop.f32.mrb[1].mxu0 }
 0x103   : > { %v509_v7 = vmax.f32 %v398_v4, %v503_v5  ;;  %v1587_v8 = vpop.f32.mrb[1].mxu1  ;;  %v401_v9 = vpop.f32.mrb[2].mxu0 }
 0x104   : > { %v506_v10 = vpop.f32.mrb[2].mxu1  ;;  %v1568_v11 = vpop.f32.mrb[3].mxu0 }
 0x105   : > { %v1588_v12 = vpop.f32.mrb[3].mxu1 }
 0x121   : > { %v609_v13 = vpop.f32.mrb[4].mxu0 }
 0x122   : > { %v615_v14 = vmax.f32 %v509_v7, %v609_v13  ;;  %v715_v15 = vpop.f32.mrb[4].mxu1  ;;  %v1607_v16 = vpop.f32.mrb[5].mxu0 }
 0x123   : > { %v1627_v17 = vpop.f32.mrb[5].mxu1  ;;  %v612_v18 = vpop.f32.mrb[6].mxu0 }
 0x124   : > { %v721_v19 = vmax.f32 %v615_v14, %v715_v15  ;;  %v718_v20 = vpop.f32.mrb[6].mxu1  ;;  %v1608_v21 = vpop.f32.mrb[7].mxu0 }
 0x125   : > { %v1628_v22 = vpop.f32.mrb[7].mxu1 }
 0x141   : > { %v821_v23 = vpop.f32.mrb[8].mxu0 }
 0x142   : > { %v827_v24 = vmax.f32 %v721_v19, %v821_v23  ;;  %v927_v25 = vpop.f32.mrb[8].mxu1  ;;  %v1647_v26 = vpop.f32.mrb[9].mxu0 }
 0x143   : > { %v1667_v27 = vpop.f32.mrb[9].mxu1  ;;  %v824_v28 = vpop.f32.mrb[10].mxu0 }
 0x144   : > { %v933_v29 = vmax.f32 %v827_v24, %v927_v25  ;;  %v930_v30 = vpop.f32.mrb[10].mxu1  ;;  %v1648_v31 = vpop.f32.mrb[11].mxu0 }
 0x145   : > { %v1668_v32 = vpop.f32.mrb[11].mxu1 }
 0x161   : > { %v1033_v33 = vpop.f32.mrb[12].mxu0 }
 0x162   : > { %v1039_v34 = vmax.f32 %v933_v29, %v1033_v33  ;;  %v1139_v35 = vpop.f32.mrb[12].mxu1  ;;  %v1687_v36 = vpop.f32.mrb[13].mxu0 }
 0x163   : > { %v1707_v37 = vpop.f32.mrb[13].mxu1  ;;  %v1036_v38 = vpop.f32.mrb[14].mxu0 }
 0x164   : > { %v1145_v40 = vmax.f32 %v1039_v34, %v1139_v35  ;;  %v1142_v41 = vpop.f32.mrb[14].mxu1  ;;  %v1688_v42 = vpop.f32.mrb[15].mxu0 }
 0x165   : > { %v1708_v43 = vpop.f32.mrb[15].mxu1 }
 0x166   : > { %v1153_v44 = vadd.f32 %v1472_v39, %v1145_v40 }
 0x168   : > { %1166 = vrot.lane.b32.xlu1 %v1153_v44, %s1885_s10  ;;  %s1823_s10 = scalar_lea.vmem %s1822_s9, 256 }
 0x169   : > { %p1825_p1 = scmp.lt.s32.totalorder %s1823_s10, %s1817_s25 }
 0x16b   : > { %p1826_p2 = por %p1825_p1, %p1824_p0 }
 0x16d   : > { %p1827_p3 = pnand %p1826_p2, %p1820_p13 }
 0x1da   : > { %v1167_v50 = vpop.permute.xlu1 %1166 }
 0x1db   : > { %v1174_v51 = vsel %vm1173_vm3, %v1172_v49, %v1167_v50 }
 0x1dc   : > { %v1176_v52 = vsel %vm1175_vm4, %v1174_v51, 0.0 }
 0x1dd   : > { %1177 = vst [vmem:[%s281_s19] sm:$0xff] %v1176_v52 }
 0x1de   : > { %1830 = shalt.err (!%p1827_p3)
}
 0x1df   : > { %s1831_s11 = scalar_lea.hbm %s2283_s29, 128  ;;  %s1835_s15 = scalar_lea.hbm %s2331_s6, 256 }
 0x1e0   : > { %p1832_p4 = scmp.ne.s32.totalorder %s2283_s29, %s1831_s11  ;;  %p1836_p9 = scmp.lt.u32.totalorder %s2283_s29, %s2331_s6 }
 0x1e1   : > { %p1837_p10 = scmp.lt.u32.totalorder %s1835_s15, %s1831_s11  ;;  %p1839_p12 = scmp.lt.u32.totalorder %s1831_s11, %s2283_s29 }
 0x1e2   : > { %p1833_p7 = pnand %p1832_p4, %p1960_p5 }
 0x1e3   : > { %p1838_p11 = por %p1837_p10, %p1836_p9 }
 0x1e4   : > { %p1834_p8 = pneg %p1833_p7 }
 0x1e5   : > { %p1840_p13 = por %p1839_p12, %p1838_p11 }
 0x1e7   : > { %p1841_p0 = pnand %p1840_p13, %p1834_p8 }
 0x1e9   : > { %1844 = shalt.err (!%p1841_p0)
}
 0x1ea   : > { %1709 = dma.vmem_to_hbm [thread:$0]  (%p1960_p5), %s2285_s20, 128, %s2283_s29, %s1179_s14  }
 0x1eb PF: > { %p1715_p1 = scmp.ge.s32.totalorder %s1879_s24, 2  ;;  %s1204_s19 = sand.u32 1, %s1867_s21  }
 0x1ec   : > { %s1205_s26 = scalar_lea.sflag [#allocation3], %s1204_s19 }
 0x1ed   : > { %p1712_p2 = pnand %p1715_p1, %p1964_p6 }
 0x1ef   : > { %1862 = dma.done.wait (!%p1712_p2), %s1205_s26, 128  }
 0x1f0   : > { %1864 = vsyncadd (!%p1712_p2), %s1205_s26, 4294967168  ;;  %p16_p3 = scmp.ge.s32.totalorder %s1947_s27, 4   ;;  %s2334_s21 = smov %s1871_s22 }
 0x1f1   : > { %s2335_s22 = smov %s1875_s23  ;;  %s2336_s23 = smov %s1958_s30 }
 0x1f2   : > { %s2337_s24 = smov %s1947_s27  ;;  %18 = sbr.rel (!%p16_p3) target bundleno = 3 (0x3), region = 95 }
 0x1f9   :  { %1210 = vsyncpa [#allocation3], 1 }
 0x1fa   :  { %1212 = vsyncpa [#allocation3 + $0x1], 1 }

</bundles_post_ra>
